<compile_context>
chip_gen: v5e
topology: v5e:2x2
jax: 0.10.0
libtpu: 0.0.40
codegen_flags: <defaults>
</compile_context>

<pallas_src>
import functools

import jax
import jax.numpy as jnp
from jax.experimental import pallas as pl
from jax.experimental.pallas import tpu as pltpu

ALPHA = 1.0
GAMMA = 2.0  # exactly 2 -> implemented as an explicit square

LANES = 128
SUBLANES = 8
MAX_BLOCK_ROWS = 4096  # 4096 x 128 f32 = 2 MiB per block per input
N_OUTER = 2            # megacore split of the reduction (v7x has 2 TCs/chip)


def _cdiv(a, b):
    return (a + b - 1) // b


def _round_up(x, m):
    return (x + m - 1) // m * m


def _focal_loss_kernel(x_ref, t_ref, o_ref, acc_ref, *,
                       n_valid, block_rows, inner, apply_mask):
    k = pl.program_id(1)

    @pl.when(k == 0)
    def _():
        acc_ref[...] = jnp.zeros_like(acc_ref)

    x = x_ref[...].astype(jnp.float32)
    t = t_ref[...].astype(jnp.float32)

    # Numerically-stable binary_cross_entropy_with_logits (reduction='none'):
    #   ce = max(x, 0) - x*t + log1p(exp(-|x|))
    ce = jnp.maximum(x, 0.0) - x * t + jnp.log1p(jnp.exp(-jnp.abs(x)))
    pt = jnp.exp(-ce)
    q = 1.0 - pt
    f = ALPHA * (q * q) * ce  # gamma == 2 -> one VPU mul, not a float pow

    if apply_mask:
        # Zero out padded elements, garbage rows of a partial last row-block,
        # and fully-masked clamped overhang iterations.  Pure VPU filler in a
        # memory-bound kernel.  (int32 indexing: fine for < 2^31 elements.)
        base = (pl.program_id(0) * inner + k) * (block_rows * LANES)
        row_ids = jax.lax.broadcasted_iota(jnp.int32, (block_rows, LANES), 0)
        lane_ids = jax.lax.broadcasted_iota(jnp.int32, (block_rows, LANES), 1)
        idx = base + row_ids * LANES + lane_ids
        f = jnp.where(idx < n_valid, f, 0.0)

    # Lane-dense vector accumulation: fold sublane groups with pure VPU adds
    # (no per-step cross-lane XLU reduce, no scalar serial dependence).
    acc_ref[...] += f.reshape(block_rows // SUBLANES, SUBLANES, LANES).sum(axis=0)

    @pl.when(k == pl.num_programs(1) - 1)
    def _():
        o_ref[...] = acc_ref[...]


def focal_loss(inputs, targets):
    """Focal loss with alpha=1, gamma=2, reduce=True. Returns a scalar f32."""
    assert inputs.shape == targets.shape
    n_valid = int(inputs.size)
    assert n_valid > 0

    # Stream in native dtype; cast to f32 inside the kernel.
    x = inputs.reshape(-1)
    t = targets.reshape(-1)

    # Pad (copy) only when the size isn't a multiple of 8*128, and only up to
    # the next multiple of 1024 so the flat stream reshapes to a lane-dense
    # (rows, 128) slab with rows % 8 == 0.  Block-granularity raggedness is
    # handled in-kernel (no padding copy needed for it).
    n_padded = _round_up(n_valid, SUBLANES * LANES)
    if n_padded != n_valid:
        # TODO(synk): the ragged (size % 1024 != 0) case still costs one extra
        # HBM read+write per input for this pad copy.
        x = jnp.pad(x, (0, n_padded - n_valid))
        t = jnp.pad(t, (0, n_padded - n_valid))

    rows = n_padded // LANES                     # multiple of 8
    block_rows = min(rows, MAX_BLOCK_ROWS)       # multiple of 8
    total_blocks = _cdiv(rows, block_rows)
    n_outer = N_OUTER if total_blocks >= N_OUTER else 1
    inner = _cdiv(total_blocks, n_outer)

    n_processed = n_outer * inner * block_rows * LANES
    apply_mask = n_processed > n_valid

    x2 = x.reshape(rows, LANES)
    t2 = t.reshape(rows, LANES)

    last_block = total_blocks - 1
    if n_outer * inner == total_blocks:
        in_index = lambda o, k: (o * inner + k, 0)
    else:
        # Odd block count split across two cores: clamp the (fully-masked)
        # overhang iteration onto the last valid block so its DMA stays
        # in bounds.
        in_index = lambda o, k: (jnp.minimum(o * inner + k, last_block), 0)

    in_spec = pl.BlockSpec((block_rows, LANES), in_index)
    out_spec = pl.BlockSpec((None, SUBLANES, LANES), lambda o, k: (o, 0, 0))

    partial_sums = pl.pallas_call(
        functools.partial(
            _focal_loss_kernel,
            n_valid=n_valid,
            block_rows=block_rows,
            inner=inner,
            apply_mask=apply_mask,
        ),
        out_shape=jax.ShapeDtypeStruct((n_outer, SUBLANES, LANES), jnp.float32),
        grid_spec=pltpu.PrefetchScalarGridSpec(
            num_scalar_prefetch=0,
            grid=(n_outer, inner),
            in_specs=[in_spec, in_spec],
            out_specs=out_spec,
            scratch_shapes=[pltpu.VMEM((SUBLANES, LANES), jnp.float32)],
        ),
        compiler_params=pltpu.CompilerParams(
            dimension_semantics=("parallel", "arbitrary"),
        ),
    )(x2, t2)

    # Tiny final reduction over (n_outer, 8, 128) partial sums.
    return jnp.sum(partial_sums) / jnp.float32(n_valid)


def _focal_loss_ref(inputs, targets):
    x = inputs.astype(jnp.float32)
    t = targets.astype(jnp.float32)
    ce = jnp.maximum(x, 0.0) - x * t + jnp.log1p(jnp.exp(-jnp.abs(x)))
    pt = jnp.exp(-ce)
    return jnp.mean(ALPHA * (1.0 - pt) ** GAMMA * ce)


if __name__ == "__main__":
    key = jax.random.PRNGKey(0)
    k1, k2, k3, k4, k5, k6 = jax.random.split(key, 6)

    # NCHW like the PyTorch module would receive (e.g. segmentation logits).
    inputs = jax.random.normal(k1, (2, 4, 16, 16), dtype=jnp.float32)
    targets = (jax.random.uniform(k2, (2, 4, 16, 16)) > 0.5).astype(jnp.float32)
    loss = focal_loss(inputs, targets)
    jax.block_until_ready(loss)
    ref = _focal_loss_ref(inputs, targets)
    assert jnp.allclose(loss, ref, atol=1e-5, rtol=1e-5), (loss, ref)

    # Ragged size (not a multiple of 8*128) -> exercises the pad + mask path.
    inputs2 = jax.random.normal(k3, (2, 3, 15, 17), dtype=jnp.float32)
    targets2 = (jax.random.uniform(k4, (2, 3, 15, 17)) > 0.5).astype(jnp.float32)
    loss2 = focal_loss(inputs2, targets2)
    jax.block_until_ready(loss2)
    ref2 = _focal_loss_ref(inputs2, targets2)
    assert jnp.allclose(loss2, ref2, atol=1e-5, rtol=1e-5), (loss2, ref2)

    # Multi-block + megacore split + ragged last row-block + clamped overhang,
    # streamed in native bf16 (no pad copy: size is a multiple of 1024).
    inputs3 = jax.random.normal(k5, (3, 1, 640, 640), dtype=jnp.bfloat16)
    targets3 = (jax.random.uniform(k6, (3, 1, 640, 640)) > 0.5).astype(jnp.bfloat16)
    loss3 = focal_loss(inputs3, targets3)
    jax.block_until_ready(loss3)
    ref3 = _focal_loss_ref(inputs3, targets3)
    assert jnp.allclose(loss3, ref3, atol=1e-3, rtol=1e-3), (loss3, ref3)

    print("KERNEL_OK")
</pallas_src>

<mosaic_0001>
module attributes {stable_mosaic.version = 11 : i64} {
  func.func @_focal_loss_kernel(%arg0: i32, %arg1: i32, %arg2: memref<16x128xf32, #tpu.memory_space<vmem>>, %arg3: memref<16x128xf32, #tpu.memory_space<vmem>>, %arg4: memref<1x8x128xf32, #tpu.memory_space<vmem>>, %arg5: memref<8x128xf32, #tpu.memory_space<vmem>>) attributes {dimension_semantics = [#tpu.dimension_semantics<parallel>, #tpu.dimension_semantics<arbitrary>], iteration_bounds = array<i64: 1, 1>, scalar_prefetch = 0 : i64, scratch_operands = 1 : i64, tpu.core_type = #tpu.core_type<tc>, window_params = [{transform_indices = @transform_0, window_bounds = array<i64: 16, 128>}, {transform_indices = @transform_1, window_bounds = array<i64: 16, 128>}, {transform_indices = @transform_2, window_bounds = array<i64: 1, 8, 128>}]} {
    %c0_i32 = arith.constant 0 : i32
    %0 = arith.cmpi eq, %arg1, %c0_i32 : i32
    %1 = arith.extui %0 : i1 to i32
    %c0_i32_0 = arith.constant 0 : i32
    %2 = arith.cmpi ne, %1, %c0_i32_0 : i32
    scf.if %2 {
      %cst_15 = arith.constant 0.000000e+00 : f32
      %32 = vector.broadcast %cst_15 : f32 to vector<8x128xf32>
      %c0_16 = arith.constant 0 : index
      %c0_17 = arith.constant 0 : index
      %33 = vector.load %arg5[%c0_16, %c0_17] : memref<8x128xf32, #tpu.memory_space<vmem>>, vector<8x128xf32>
      tpu.vector_store %arg5[%c0_16, %c0_17], %32 {strides = array<i32>} : memref<8x128xf32, #tpu.memory_space<vmem>>, vector<8x128xf32>,
    } else {
    }
    %c0 = arith.constant 0 : index
    %c0_1 = arith.constant 0 : index
    %3 = vector.load %arg2[%c0, %c0_1] : memref<16x128xf32, #tpu.memory_space<vmem>>, vector<16x128xf32>
    %c0_2 = arith.constant 0 : index
    %c0_3 = arith.constant 0 : index
    %4 = vector.load %arg3[%c0_2, %c0_3] : memref<16x128xf32, #tpu.memory_space<vmem>>, vector<16x128xf32>
    %cst = arith.constant 0.000000e+00 : f32
    %5 = vector.broadcast %cst : f32 to vector<16x128xf32>
    %6 = arith.maximumf %3, %5 : vector<16x128xf32>
    %7 = arith.mulf %3, %4 : vector<16x128xf32>
    %8 = arith.subf %6, %7 : vector<16x128xf32>
    %9 = math.absf %3 : vector<16x128xf32>
    %cst_4 = arith.constant 0.000000e+00 : f32
    %10 = vector.broadcast %cst_4 : f32 to vector<16x128xf32>
    %11 = arith.subf %10, %9 : vector<16x128xf32>
    %12 = math.exp %11 : vector<16x128xf32>
    %13 = math.log1p %12 : vector<16x128xf32>
    %14 = arith.addf %8, %13 : vector<16x128xf32>
    %cst_5 = arith.constant 0.000000e+00 : f32
    %15 = vector.broadcast %cst_5 : f32 to vector<16x128xf32>
    %16 = arith.subf %15, %14 : vector<16x128xf32>
    %17 = math.exp %16 : vector<16x128xf32>
    %cst_6 = arith.constant 1.000000e+00 : f32
    %18 = vector.broadcast %cst_6 : f32 to vector<16x128xf32>
    %19 = arith.subf %18, %17 : vector<16x128xf32>
    %20 = arith.mulf %19, %19 : vector<16x128xf32>
    %cst_7 = arith.constant 1.000000e+00 : f32
    %21 = vector.broadcast %cst_7 : f32 to vector<16x128xf32>
    %22 = arith.mulf %21, %20 : vector<16x128xf32>
    %23 = arith.mulf %22, %14 : vector<16x128xf32>
    %c0_8 = arith.constant 0 : index
    %c0_9 = arith.constant 0 : index
    %24 = vector.load %arg5[%c0_8, %c0_9] : memref<8x128xf32, #tpu.memory_space<vmem>>, vector<8x128xf32>
    %25 = vector.shape_cast %23 : vector<16x128xf32> to vector<2x8x128xf32>
    %cst_10 = arith.constant dense<0.000000e+00> : vector<8x128xf32>
    %26 = vector.multi_reduction <add>, %25, %cst_10 [0] : vector<2x8x128xf32> to vector<8x128xf32>
    %27 = arith.addf %24, %26 : vector<8x128xf32>
    %c0_11 = arith.constant 0 : index
    %c0_12 = arith.constant 0 : index
    %28 = vector.load %arg5[%c0_11, %c0_12] : memref<8x128xf32, #tpu.memory_space<vmem>>, vector<8x128xf32>
    tpu.vector_store %arg5[%c0_11, %c0_12], %27 {strides = array<i32>} : memref<8x128xf32, #tpu.memory_space<vmem>>, vector<8x128xf32>,
    %c0_i32_13 = arith.constant 0 : i32
    %29 = arith.cmpi eq, %arg1, %c0_i32_13 : i32
    %30 = arith.extui %29 : i1 to i32
    %c0_i32_14 = arith.constant 0 : i32
    %31 = arith.cmpi ne, %30, %c0_i32_14 : i32
    scf.if %31 {
      %c0_15 = arith.constant 0 : index
      %c0_16 = arith.constant 0 : index
      %32 = vector.load %arg5[%c0_15, %c0_16] : memref<8x128xf32, #tpu.memory_space<vmem>>, vector<8x128xf32>
      %c0_17 = arith.constant 0 : index
      %c0_18 = arith.constant 0 : index
      %c0_19 = arith.constant 0 : index
      %33 = vector.load %arg4[%c0_17, %c0_18, %c0_19] : memref<1x8x128xf32, #tpu.memory_space<vmem>>, vector<1x8x128xf32>
      %34 = vector.shape_cast %33 : vector<1x8x128xf32> to vector<8x128xf32>
      %35 = vector.shape_cast %32 : vector<8x128xf32> to vector<1x8x128xf32>
      tpu.vector_store %arg4[%c0_17, %c0_18, %c0_19], %35 {strides = array<i32>} : memref<1x8x128xf32, #tpu.memory_space<vmem>>, vector<1x8x128xf32>,
    } else {
    }
    return
  }
  func.func @transform_0(%arg0: i32, %arg1: i32) -> (i32, i32) {
    %c1_i32 = arith.constant 1 : i32
    %0 = arith.muli %arg0, %c1_i32 : i32
    %1 = arith.addi %0, %arg1 : i32
    %c0_i32 = arith.constant 0 : i32
    %c0_i32_0 = arith.constant 0 : i32
    return %1, %c0_i32 : i32, i32
  }
  func.func @transform_1(%arg0: i32, %arg1: i32) -> (i32, i32) {
    %c1_i32 = arith.constant 1 : i32
    %0 = arith.muli %arg0, %c1_i32 : i32
    %1 = arith.addi %0, %arg1 : i32
    %c0_i32 = arith.constant 0 : i32
    %c0_i32_0 = arith.constant 0 : i32
    return %1, %c0_i32 : i32, i32
  }
  func.func @transform_2(%arg0: i32, %arg1: i32) -> (i32, i32, i32) {
    %c0_i32 = arith.constant 0 : i32
    %c0_i32_0 = arith.constant 0 : i32
    %c0_i32_1 = arith.constant 0 : i32
    return %arg0, %c0_i32, %c0_i32_0 : i32, i32, i32
  }
}

</mosaic_0001>

<bundles_post_ra>
// kernel: tpu_custom_call.1
= control target key start
LH: loop header
LB: loop body
LE: loop exit
PB: predicated region body
PF: predicated region fallthrough
CT: control target
= control target key end

     0   :  { %7 = vsyncpa [#allocation4], 0  ;;  %s262_s0 = inlined_call_operand.hbm [shape: f32[16,128], index: 0, kind: input, shape index: {}]   ;;  %s263_s1 = inlined_call_operand.hbm [shape: f32[16,128], index: 1, kind: input, shape index: {}]   ;;  %s264_s2 = inlined_call_operand.hbm [shape: f32[1,8,128], index: 2, kind: output, shape index: {}]  }
   0x1   :  { %8 = vsyncpa [#allocation7], 0 }
   0x2   :  { %9 = vsyncpa [#allocation5], 0  ;;  %s18_s11 = sshll.u32 %s262_s0, 4  ;;  %s233_s12 = smov [#allocation3]   ;;  %s19_s11 = int_to_ptr.hbm [resolvable:$true] %s18_s11 }
   0x3   :  { %s20_s13 = sshll.u32 %s233_s12, 4  ;;  %s35_s16 = sshll.u32 %s263_s1, 4  ;;  %s21_s13 = int_to_ptr.vmem [resolvable:$true] %s20_s13  ;;  %s36_s16 = int_to_ptr.hbm [resolvable:$true] %s35_s16 }
   0x4   :  { %s234_s17 = smov 128   ;;  %s235_s18 = smov 8  }
   0x5   :  { %26 = dma.hbm_to_vmem [thread:$0]  %s19_s11, 256, %s21_s13, [#allocation4], %s234_s17, %s234_s17, %s235_s18  }
   0x6   :  { %s236_s19 = smov [#allocation6]  }
   0x7   :  { %s37_s20 = sshll.u32 %s236_s19, 4  ;;  %s38_s20 = int_to_ptr.vmem [resolvable:$true] %s37_s20 }
   0x8   :  { %43 = dma.hbm_to_vmem [thread:$0]  %s36_s16, 256, %s38_s20, [#allocation7], %s234_s17, %s234_s17, %s235_s18  }
   0x9   :  { %227 = dma.done.wait [#allocation4], 256  }
   0xa   :  { %228 = vsyncadd [#allocation4], 4294967040 }
   0xb   :  { %229 = dma.done.wait [#allocation7], 256  }
   0xc   :  { %230 = vsyncadd [#allocation7], 4294967040  ;;  %v61_v0 = vld [vmem:[#allocation3] sm:$0xff]  ;;  %v62_v1 = vld [vmem:[#allocation3 + $0x8] sm:$0xff]  ;;  %s237_s0 = smov [#allocation8]   ;;  %s127_s23 = sshll.u32 %s264_s2, 4  ;;  %s128_s23 = int_to_ptr.hbm [resolvable:$true] %s127_s23 }
   0xd   :  { %v71_v2 = vand.u32 2147483647, %v61_v0  ;;  %v72_v3 = vand.u32 2147483647, %v62_v1  ;;  %v63_v12 = vld [vmem:[#allocation6] sm:$0xff]  ;;  %v64_v15 = vld [vmem:[#allocation6 + $0x8] sm:$0xff] }
   0xe   :  { %v65_v17 = vmax.f32 %v61_v0, 0.0  ;;  %v67_v18 = vmul.f32 %v63_v12, %v61_v0  ;;  %v66_v21 = vmax.f32 %v62_v1, 0.0  ;;  %v68_v22 = vmul.f32 %v64_v15, %v62_v1  ;;  %s125_s1 = sshll.u32 %s237_s0, 4  ;;  %s126_s1 = int_to_ptr.vmem [resolvable:$true] %s125_s1 }
   0xf   :  { %v73_v4 = vsub.f32 0.0, %v71_v2  ;;  %v74_v5 = vsub.f32 0.0, %v72_v3 }
  0x10   :  { %v69_v26 = vsub.f32 %v65_v17, %v67_v18  ;;  %v70_v29 = vsub.f32 %v66_v21, %v68_v22 }
  0x11   :  { %v75_v6 = vmul.f32 1.442695, %v73_v4  ;;  %v77_v7 = vmul.f32 1.442695, %v74_v5 }
  0x13   :  { %143 = vpow2.f32 %v75_v6 }
  0x14   :  { %145 = vpow2.f32 %v77_v7 }
  0x19   :  { %v144_v8 = vpop.eup %143 }
  0x1a   :  { %v146_v9 = vpop.eup %145  ;;  %v79_v10 = vadd.f32 1.0, %v144_v8  ;;  %v82_v11 = vmul.f32 -0.5, %v144_v8  ;;  %v85_v19 = vand.u32 2147483647, %v144_v8 }
  0x1b   :  { %v88_v13 = vadd.f32 1.0, %v146_v9  ;;  %v91_v14 = vmul.f32 -0.5, %v146_v9  ;;  %v94_v23 = vand.u32 2147483647, %v146_v9 }
  0x1c   :  { %147 = vlog2.f32 %v79_v10  ;;  %v83_v16 = vadd.f32 1.0, %v82_v11  ;;  %vm86_vm0 = vcmp.lt.f32.partialorder %v85_v19, 0.0004427343 }
  0x1d   :  { %149 = vlog2.f32 %v88_v13  ;;  %v92_v20 = vadd.f32 1.0, %v91_v14  ;;  %vm95_vm1 = vcmp.lt.f32.partialorder %v94_v23, 0.0004427343 }
  0x1e   :  { %v84_v24 = vmul.f32 %v144_v8, %v83_v16 }
  0x1f   :  { %v93_v27 = vmul.f32 %v146_v9, %v92_v20 }
  0x22   :  { %v148_v25 = vpop.eup %147 }
  0x23   :  { %v150_v28 = vpop.eup %149  ;;  %v81_v30 = vmul.f32 0.6931472, %v148_v25 }
  0x24   :  { %v90_v31 = vmul.f32 0.6931472, %v150_v28 }
  0x25   :  { %v87_v32 = vsel %vm86_vm0, %v84_v24, %v81_v30 }
  0x26   :  { %v96_v33 = vsel %vm95_vm1, %v93_v27, %v90_v31  ;;  %v97_v34 = vadd.f32 %v87_v32, %v69_v26 }
  0x27   :  { %v98_v35 = vadd.f32 %v96_v33, %v70_v29 }
  0x28   :  { %v99_v36 = vsub.f32 0.0, %v97_v34 }
  0x29   :  { %v100_v37 = vsub.f32 0.0, %v98_v35 }
  0x2a   :  { %v101_v38 = vmul.f32 1.442695, %v99_v36 }
  0x2b   :  { %v103_v39 = vmul.f32 1.442695, %v100_v37 }
  0x2c   :  { %151 = vpow2.f32 %v101_v38 }
  0x2d   :  { %153 = vpow2.f32 %v103_v39 }
  0x32   :  { %v152_v40 = vpop.eup %151 }
  0x33   :  { %v154_v41 = vpop.eup %153  ;;  %v105_v42 = vsub.f32 1.0, %v152_v40 }
  0x34   :  { %v106_v43 = vsub.f32 1.0, %v154_v41 }
  0x35   :  { %v107_v44 = vmul.f32 %v105_v42, %v105_v42 }
  0x36   :  { %v108_v45 = vmul.f32 %v106_v43, %v106_v43 }
  0x37   :  { %v109_v46 = vmul.f32 %v107_v44, %v97_v34 }
  0x38   :  { %v110_v47 = vmul.f32 %v108_v45, %v98_v35 }
  0x3a   :  { %v112_v48 = vadd.f32 %v110_v47, %v109_v46 }
  0x3c   :  { %119 = vst [vmem:[#allocation8] sm:$0xff] %v112_v48 }
  0x3d   :  { %130 = dma.vmem_to_hbm [thread:$0]  %s126_s1, 128, %s128_s23, [#allocation5]  }
  0x3e   :  { %231 = dma.done.wait [#allocation5], 128  }
  0x3f   :  { %232 = vsyncadd [#allocation5], 4294967168 }
  0x40   :  { %135 = vsyncpa [#allocation4], 1 }
  0x41   :  { %136 = vsyncpa [#allocation7], 1 }
  0x42   :  { %137 = vsyncpa [#allocation5], 1 }

</bundles_post_ra>
